<compile_context>
chip_gen: v6e
topology: v6e:2x2x1
jax: 0.10.0
libtpu: 0.0.40
codegen_flags: <defaults>
</compile_context>

<pallas_src>
import functools

import jax
import jax.numpy as jnp
from jax.experimental import pallas as pl
from jax.experimental.pallas import tpu as pltpu

_LANE = 128
_SUB = 8


def _round_up(x, m):
    return (x + m - 1) // m * m


def _jsd_partial(logq_ref, logp_ref, beta):
    """JSD terms of the current (tn, tv) tile, reduced to one (8, 128) tile.

    Reads the tile 128 lanes at a time directly from the refs so only
    (tn, 128)-sized intermediates are ever live in VMEM/vregs.
    """
    tn, tv = logq_ref.shape
    one_m_beta = 1.0 - beta

    part = None
    for c in range(tv // _LANE):
        sl = slice(c * _LANE, (c + 1) * _LANE)
        log_p = logp_ref[:, sl].astype(jnp.float32)
        log_q = logq_ref[:, sl].astype(jnp.float32)
        p = jnp.exp(log_p)
        q = jnp.exp(log_q)
        m = beta * p + one_m_beta * q
        # Algebraically identical to
        #   beta * p * (log_p - log m) + (1 - beta) * q * (log_q - log m)
        # but with fewer VALU ops per vreg (same 2 exp + 1 log on the EUP).
        term = beta * (p * log_p) + one_m_beta * (q * log_q) - m * jnp.log(m)
        part = term if part is None else part + term

    # Fold sublane groups down to a single lane-dense (8, 128) tile (pure VPU).
    acc = part[0:_SUB, :]
    for r in range(1, tn // _SUB):
        acc = acc + part[r * _SUB:(r + 1) * _SUB, :]
    return acc


def _jsd_kernel_1d(logq_ref, logp_ref, out_ref, *, beta):
    # Whole V in one block: write this row-block's lane-dense partial sums directly.
    out_ref[0] = _jsd_partial(logq_ref, logp_ref, beta)


def _jsd_kernel_2d(logq_ref, logp_ref, out_ref, acc_ref, *, beta):
    j = pl.program_id(1)

    @pl.when(j == 0)
    def _():
        acc_ref[...] = jnp.zeros_like(acc_ref)

    acc_ref[...] += _jsd_partial(logq_ref, logp_ref, beta)

    @pl.when(j == pl.num_programs(1) - 1)
    def _():
        out_ref[0] = acc_ref[...]


def jsd_loss(log_q, log_p, *, beta=0.5, block_n=None, block_v=None):
    """Pallas implementation of TorchJSD.forward(log_q, log_p, label=None)."""
    V = log_q.shape[-1]
    log_q2 = log_q.reshape(-1, V)
    log_p2 = log_p.reshape(-1, V)
    N = log_q2.shape[0]

    # ---- tile selection (conservative so it fits every current TPU gen) ----
    v_ru = _round_up(V, _LANE)
    if block_v is not None:
        tv = block_v
    else:
        # Single-block V path up to 8192 (intermediates stay small thanks to
        # chunked compute); larger vocabularies stream along a reduction axis.
        tv = v_ru if v_ru <= 8192 else 2048
    v_pad = _round_up(v_ru, tv)

    if block_n is not None:
        tn = block_n
    else:
        # 2 inputs x 2 pipeline buffers x tn x tv x 4 B  <=  ~24 MiB
        budget_elems = (24 * 1024 * 1024) // (2 * 2 * 4)
        tn = max(_SUB, min(512, (budget_elems // tv) // _SUB * _SUB))
        tn = min(tn, _round_up(N, _SUB))
    n_pad = _round_up(_round_up(N, _SUB), tn)

    # Zero padding is exact: padded entries have log_p == log_q == 0, so
    # p == q == m == 1 and the JSD term is exactly 0.  Division uses real N.
    if (n_pad, v_pad) != (N, V):
        log_q2 = jnp.pad(log_q2, ((0, n_pad - N), (0, v_pad - V)))
        log_p2 = jnp.pad(log_p2, ((0, n_pad - N), (0, v_pad - V)))

    grid_i = n_pad // tn
    grid_j = v_pad // tv
    out_shape = jax.ShapeDtypeStruct((grid_i, _SUB, _LANE), jnp.float32)

    if grid_j == 1:
        partials = pl.pallas_call(
            functools.partial(_jsd_kernel_1d, beta=float(beta)),
            out_shape=out_shape,
            grid_spec=pltpu.PrefetchScalarGridSpec(
                num_scalar_prefetch=0,
                grid=(grid_i,),
                in_specs=[
                    pl.BlockSpec((tn, tv), lambda i: (i, 0)),
                    pl.BlockSpec((tn, tv), lambda i: (i, 0)),
                ],
                out_specs=pl.BlockSpec((1, _SUB, _LANE), lambda i: (i, 0, 0)),
            ),
            compiler_params=pltpu.CompilerParams(
                dimension_semantics=("parallel",),
                vmem_limit_bytes=48 * 1024 * 1024,
            ),
        )(log_q2, log_p2)
    else:
        partials = pl.pallas_call(
            functools.partial(_jsd_kernel_2d, beta=float(beta)),
            out_shape=out_shape,
            grid_spec=pltpu.PrefetchScalarGridSpec(
                num_scalar_prefetch=0,
                grid=(grid_i, grid_j),
                in_specs=[
                    pl.BlockSpec((tn, tv), lambda i, j: (i, j)),
                    pl.BlockSpec((tn, tv), lambda i, j: (i, j)),
                ],
                out_specs=pl.BlockSpec((1, _SUB, _LANE), lambda i, j: (i, 0, 0)),
                scratch_shapes=[pltpu.VMEM((_SUB, _LANE), jnp.float32)],
            ),
            compiler_params=pltpu.CompilerParams(
                dimension_semantics=("parallel", "arbitrary"),
                vmem_limit_bytes=48 * 1024 * 1024,
            ),
        )(log_q2, log_p2)

    # Tiny epilogue: tree-reduce the lane-dense partials, divide by real N.
    return jnp.sum(partials) / jnp.float32(N)


def _jsd_reference(log_q, log_p, beta=0.5):
    V = log_q.shape[-1]
    log_q = log_q.reshape(-1, V).astype(jnp.float32)
    log_p = log_p.reshape(-1, V).astype(jnp.float32)
    p = jnp.exp(log_p)
    q = jnp.exp(log_q)
    log_m = jnp.log(beta * p + (1.0 - beta) * q)
    row = beta * jnp.sum(p * (log_p - log_m), axis=-1) + (1.0 - beta) * jnp.sum(
        q * (log_q - log_m), axis=-1
    )
    return jnp.sum(row / log_q.shape[0])


if __name__ == "__main__":
    key = jax.random.PRNGKey(0)

    def make_inputs(k, b, t, v):
        kq, kp = jax.random.split(k)
        lq = jax.nn.log_softmax(jax.random.normal(kq, (b, t, v), jnp.float32), -1)
        lp = jax.nn.log_softmax(jax.random.normal(kp, (b, t, v), jnp.float32), -1)
        return lq, lp

    k1, k2, k3 = jax.random.split(key, 3)

    # 1) Small shape: batch=2, seq=8, vocab=256 -> V fits in one block (1-D grid).
    lq, lp = make_inputs(k1, 2, 8, 256)
    out = jax.block_until_ready(jsd_loss(lq, lp, beta=0.5))
    ref = _jsd_reference(lq, lp, beta=0.5)
    assert jnp.allclose(out, ref, rtol=1e-5, atol=1e-6), (out, ref)

    # 2) Force a tiled-V 2-D grid (exercises the accumulator kernel).
    lq, lp = make_inputs(k2, 2, 8, 256)
    out = jax.block_until_ready(jsd_loss(lq, lp, beta=0.3, block_n=8, block_v=128))
    ref = _jsd_reference(lq, lp, beta=0.3)
    assert jnp.allclose(out, ref, rtol=1e-5, atol=1e-6), (out, ref)

    # 3) Ragged shapes (N and V not tile multiples) -> zero-padding path.
    lq, lp = make_inputs(k3, 1, 10, 200)
    out = jax.block_until_ready(jsd_loss(lq, lp, beta=0.5))
    ref = _jsd_reference(lq, lp, beta=0.5)
    assert jnp.allclose(out, ref, rtol=1e-5, atol=1e-6), (out, ref)

    print("KERNEL_OK")
</pallas_src>

<mosaic_0001>
module attributes {stable_mosaic.version = 11 : i64} {
  func.func @_jsd_kernel_1d(%arg0: i32, %arg1: memref<16x256xf32, #tpu.memory_space<vmem>>, %arg2: memref<16x256xf32, #tpu.memory_space<vmem>>, %arg3: memref<1x8x128xf32, #tpu.memory_space<vmem>>) attributes {dimension_semantics = [#tpu.dimension_semantics<parallel>], iteration_bounds = array<i64: 1>, scalar_prefetch = 0 : i64, scratch_operands = 0 : i64, tpu.core_type = #tpu.core_type<tc>, window_params = [{transform_indices = @transform_0, window_bounds = array<i64: 16, 256>}, {transform_indices = @transform_1, window_bounds = array<i64: 16, 256>}, {transform_indices = @transform_2, window_bounds = array<i64: 1, 8, 128>}]} {
    %c0 = arith.constant 0 : index
    %c0_0 = arith.constant 0 : index
    %0 = vector.load %arg2[%c0, %c0_0] : memref<16x256xf32, #tpu.memory_space<vmem>>, vector<16x128xf32>
    %c0_1 = arith.constant 0 : index
    %c0_2 = arith.constant 0 : index
    %1 = vector.load %arg1[%c0_1, %c0_2] : memref<16x256xf32, #tpu.memory_space<vmem>>, vector<16x128xf32>
    %2 = math.exp %0 : vector<16x128xf32>
    %3 = math.exp %1 : vector<16x128xf32>
    %cst = arith.constant 5.000000e-01 : f32
    %4 = vector.broadcast %cst : f32 to vector<16x128xf32>
    %5 = arith.mulf %4, %2 : vector<16x128xf32>
    %cst_3 = arith.constant 5.000000e-01 : f32
    %6 = vector.broadcast %cst_3 : f32 to vector<16x128xf32>
    %7 = arith.mulf %6, %3 : vector<16x128xf32>
    %8 = arith.addf %5, %7 : vector<16x128xf32>
    %9 = arith.mulf %2, %0 : vector<16x128xf32>
    %cst_4 = arith.constant 5.000000e-01 : f32
    %10 = vector.broadcast %cst_4 : f32 to vector<16x128xf32>
    %11 = arith.mulf %10, %9 : vector<16x128xf32>
    %12 = arith.mulf %3, %1 : vector<16x128xf32>
    %cst_5 = arith.constant 5.000000e-01 : f32
    %13 = vector.broadcast %cst_5 : f32 to vector<16x128xf32>
    %14 = arith.mulf %13, %12 : vector<16x128xf32>
    %15 = arith.addf %11, %14 : vector<16x128xf32>
    %16 = math.log %8 : vector<16x128xf32>
    %17 = arith.mulf %8, %16 : vector<16x128xf32>
    %18 = arith.subf %15, %17 : vector<16x128xf32>
    %c0_6 = arith.constant 0 : index
    %c128 = arith.constant 128 : index
    %19 = vector.load %arg2[%c0_6, %c128] : memref<16x256xf32, #tpu.memory_space<vmem>>, vector<16x128xf32>
    %c0_7 = arith.constant 0 : index
    %c128_8 = arith.constant 128 : index
    %20 = vector.load %arg1[%c0_7, %c128_8] : memref<16x256xf32, #tpu.memory_space<vmem>>, vector<16x128xf32>
    %21 = math.exp %19 : vector<16x128xf32>
    %22 = math.exp %20 : vector<16x128xf32>
    %cst_9 = arith.constant 5.000000e-01 : f32
    %23 = vector.broadcast %cst_9 : f32 to vector<16x128xf32>
    %24 = arith.mulf %23, %21 : vector<16x128xf32>
    %cst_10 = arith.constant 5.000000e-01 : f32
    %25 = vector.broadcast %cst_10 : f32 to vector<16x128xf32>
    %26 = arith.mulf %25, %22 : vector<16x128xf32>
    %27 = arith.addf %24, %26 : vector<16x128xf32>
    %28 = arith.mulf %21, %19 : vector<16x128xf32>
    %cst_11 = arith.constant 5.000000e-01 : f32
    %29 = vector.broadcast %cst_11 : f32 to vector<16x128xf32>
    %30 = arith.mulf %29, %28 : vector<16x128xf32>
    %31 = arith.mulf %22, %20 : vector<16x128xf32>
    %cst_12 = arith.constant 5.000000e-01 : f32
    %32 = vector.broadcast %cst_12 : f32 to vector<16x128xf32>
    %33 = arith.mulf %32, %31 : vector<16x128xf32>
    %34 = arith.addf %30, %33 : vector<16x128xf32>
    %35 = math.log %27 : vector<16x128xf32>
    %36 = arith.mulf %27, %35 : vector<16x128xf32>
    %37 = arith.subf %34, %36 : vector<16x128xf32>
    %38 = arith.addf %18, %37 : vector<16x128xf32>
    %39 = vector.extract_strided_slice %38 {offsets = [0, 0], sizes = [8, 128], strides = [1, 1]} : vector<16x128xf32> to vector<8x128xf32>
    %40 = vector.extract_strided_slice %38 {offsets = [8, 0], sizes = [8, 128], strides = [1, 1]} : vector<16x128xf32> to vector<8x128xf32>
    %41 = arith.addf %39, %40 : vector<8x128xf32>
    %c0_13 = arith.constant 0 : index
    %c0_14 = arith.constant 0 : index
    %c0_15 = arith.constant 0 : index
    %42 = vector.load %arg3[%c0_13, %c0_14, %c0_15] : memref<1x8x128xf32, #tpu.memory_space<vmem>>, vector<1x8x128xf32>
    %43 = vector.shape_cast %42 : vector<1x8x128xf32> to vector<8x128xf32>
    %44 = vector.shape_cast %41 : vector<8x128xf32> to vector<1x8x128xf32>
    tpu.vector_store %arg3[%c0_13, %c0_14, %c0_15], %44 {strides = array<i32>} : memref<1x8x128xf32, #tpu.memory_space<vmem>>, vector<1x8x128xf32>,
    return
  }
  func.func @transform_0(%arg0: i32) -> (i32, i32) {
    %c0_i32 = arith.constant 0 : i32
    %c0_i32_0 = arith.constant 0 : i32
    return %arg0, %c0_i32 : i32, i32
  }
  func.func @transform_1(%arg0: i32) -> (i32, i32) {
    %c0_i32 = arith.constant 0 : i32
    %c0_i32_0 = arith.constant 0 : i32
    return %arg0, %c0_i32 : i32, i32
  }
  func.func @transform_2(%arg0: i32) -> (i32, i32, i32) {
    %c0_i32 = arith.constant 0 : i32
    %c0_i32_0 = arith.constant 0 : i32
    %c0_i32_1 = arith.constant 0 : i32
    return %arg0, %c0_i32, %c0_i32_0 : i32, i32, i32
  }
}

</mosaic_0001>

<bundles_post_ra>
// kernel: tpu_custom_call.1
= control target key start
LH: loop header
LB: loop body
LE: loop exit
PB: predicated region body
PF: predicated region fallthrough
CT: control target
= control target key end

     0   :  { %7 = vsyncpa [#allocation3], 0  ;;  %s256_s0 = inlined_call_operand.hbm [shape: f32[16,256], index: 0, kind: input, shape index: {}]   ;;  %s257_s1 = inlined_call_operand.hbm [shape: f32[16,256], index: 1, kind: input, shape index: {}]   ;;  %s258_s2 = inlined_call_operand.hbm [shape: f32[1,8,128], index: 2, kind: output, shape index: {}]  }
   0x1   :  { %8 = vsyncpa [#allocation6], 0 }
   0x2   :  { %9 = vsyncpa [#allocation4], 0  ;;  %s227_s9 = smov [#allocation2]  }
   0x3   :  { %s15_s10 = sshll.u32 %s227_s9, 4  ;;  %s16_s10 = int_to_ptr.vmem [resolvable:$true] %s15_s10 }
   0x4   :  { %s169_s11 = scalar_lea.vmem %s16_s10, 512  ;;  %p174_p1 = scmp.lt.s32.totalorder %s16_s10, %s16_s10 }
   0x5   :  { %p170_p0 = scmp.ne.s32.totalorder %s16_s10, %s169_s11  ;;  %p175_p2 = scmp.lt.s32.totalorder %s169_s11, %s169_s11 }
   0x7   :  { %p176_p3 = por %p175_p2, %p174_p1 }
   0x9   :  { %p177_p4 = pnand %p176_p3, %p170_p0 }
   0xb   :  { %180 = shalt.err (!%p177_p4)
}
   0xc   :  { %s228_s12 = smov 256   ;;  %s229_s13 = smov 16  }
   0xd   :  { %21 = dma.hbm_to_vmem [thread:$0]  %s256_s0, 512, %s16_s10, [#allocation3], %s228_s12, %s228_s12, %s229_s13  }
   0xe   :  { %s230_s16 = smov [#allocation5]  }
   0xf   :  { %s27_s17 = sshll.u32 %s230_s16, 4  ;;  %s28_s17 = int_to_ptr.vmem [resolvable:$true] %s27_s17 }
  0x10   :  { %s189_s18 = scalar_lea.vmem %s28_s17, 512  ;;  %p194_p6 = scmp.lt.s32.totalorder %s28_s17, %s28_s17 }
  0x11   :  { %p190_p5 = scmp.ne.s32.totalorder %s28_s17, %s189_s18  ;;  %p195_p7 = scmp.lt.s32.totalorder %s189_s18, %s189_s18 }
  0x13   :  { %p196_p8 = por %p195_p7, %p194_p6 }
  0x15   :  { %p197_p9 = pnand %p196_p8, %p190_p5 }
  0x17   :  { %200 = shalt.err (!%p197_p9)
}
  0x18   :  { %33 = dma.hbm_to_vmem [thread:$0]  %s257_s1, 512, %s28_s17, [#allocation6], %s228_s12, %s228_s12, %s229_s13  }
  0x19   :  { %221 = dma.done.wait [#allocation3], 512  }
  0x1a   :  { %222 = vsyncadd [#allocation3], 4294966784 }
  0x1b   :  { %223 = dma.done.wait [#allocation6], 512  }
  0x1c   :  { %224 = vsyncadd [#allocation6], 4294966784  ;;  %v40_v0 = vld [vmem:[#allocation5] sm:$0xff]  ;;  %v41_v1 = vld [vmem:[#allocation5 + $0x10] sm:$0xff]  ;;  %s231_s0 = smov [#allocation7]  }
  0x1d   :  { %v42_v2 = vld [vmem:[#allocation2] sm:$0xff]  ;;  %v43_v3 = vld [vmem:[#allocation2 + $0x10] sm:$0xff]  ;;  %v44_v4 = vmul.f32 1.442695, %v40_v0  ;;  %v46_v5 = vmul.f32 1.442695, %v41_v1 }
  0x1e   :  { %v76_v6 = vld [vmem:[#allocation5 + $0x8] sm:$0xff]  ;;  %v48_v7 = vmul.f32 1.442695, %v42_v2  ;;  %v50_v8 = vmul.f32 1.442695, %v43_v3  ;;  %v77_v9 = vld [vmem:[#allocation5 + $0x18] sm:$0xff] }
  0x1f   :  { %v78_v10 = vld [vmem:[#allocation2 + $0x8] sm:$0xff]  ;;  %137 = vpow2.f32 %v44_v4  ;;  %v79_v11 = vld [vmem:[#allocation2 + $0x18] sm:$0xff]  ;;  %v80_v12 = vmul.f32 1.442695, %v76_v6  ;;  %v82_v13 = vmul.f32 1.442695, %v77_v9 }
  0x20   :  { %139 = vpow2.f32 %v46_v5  ;;  %v84_v14 = vmul.f32 1.442695, %v78_v10  ;;  %v86_v15 = vmul.f32 1.442695, %v79_v11  ;;  %s122_s1 = sshll.u32 %s231_s0, 4  ;;  %s123_s1 = int_to_ptr.vmem [resolvable:$true] %s122_s1 }
  0x21   :  { %141 = vpow2.f32 %v48_v7  ;;  %s201_s21 = scalar_lea.vmem %s123_s1, 128  ;;  %p206_p11 = scmp.lt.s32.totalorder %s123_s1, %s123_s1 }
  0x22   :  { %143 = vpow2.f32 %v50_v8  ;;  %p202_p10 = scmp.ne.s32.totalorder %s123_s1, %s201_s21  ;;  %p207_p12 = scmp.lt.s32.totalorder %s201_s21, %s201_s21 }
  0x23   :  { %145 = vpow2.f32 %v80_v12 }
  0x24   :  { %147 = vpow2.f32 %v82_v13  ;;  %p208_p13 = por %p207_p12, %p206_p11 }
  0x25   :  { %149 = vpow2.f32 %v84_v14 }
  0x26   :  { %151 = vpow2.f32 %v86_v15  ;;  %p209_p0 = pnand %p208_p13, %p202_p10 }
  0x2c   :  { %v138_v16 = vpop.eup %137 }
  0x2d   :  { %v140_v17 = vpop.eup %139  ;;  %v52_v18 = vmul.f32 0.5, %v138_v16  ;;  %v58_v36 = vmul.f32 %v138_v16, %v40_v0 }
  0x2e   :  { %v142_v19 = vpop.eup %141  ;;  %v53_v20 = vmul.f32 0.5, %v140_v17  ;;  %v59_v38 = vmul.f32 %v140_v17, %v41_v1 }
  0x2f   :  { %v144_v21 = vpop.eup %143  ;;  %v54_v22 = vmul.f32 0.5, %v142_v19  ;;  %v62_v37 = vmul.f32 %v142_v19, %v42_v2  ;;  %v60_v44 = vmul.f32 0.5, %v58_v36 }
  0x30   :  { %v146_v23 = vpop.eup %145  ;;  %v55_v24 = vmul.f32 0.5, %v144_v21  ;;  %v63_v39 = vmul.f32 %v144_v21, %v43_v3  ;;  %v61_v47 = vmul.f32 0.5, %v59_v38 }
  0x31   :  { %v148_v25 = vpop.eup %147  ;;  %v56_v26 = vadd.f32 %v54_v22, %v52_v18  ;;  %v88_v27 = vmul.f32 0.5, %v146_v23  ;;  %v94_v40 = vmul.f32 %v146_v23, %v76_v6  ;;  %v64_v45 = vmul.f32 0.5, %v62_v37 }
  0x32   :  { %v150_v28 = vpop.eup %149  ;;  %v57_v29 = vadd.f32 %v55_v24, %v53_v20  ;;  %v89_v30 = vmul.f32 0.5, %v148_v25  ;;  %v95_v42 = vmul.f32 %v148_v25, %v77_v9  ;;  %v65_v48 = vmul.f32 0.5, %v63_v39 }
  0x33   :  { %v152_v31 = vpop.eup %151  ;;  %153 = vlog2.f32 %v56_v26  ;;  %v90_v32 = vmul.f32 0.5, %v150_v28  ;;  %v98_v41 = vmul.f32 %v150_v28, %v78_v10  ;;  %v96_v51 = vmul.f32 0.5, %v94_v40 }
  0x34   :  { %155 = vlog2.f32 %v57_v29  ;;  %v91_v33 = vmul.f32 0.5, %v152_v31  ;;  %v99_v43 = vmul.f32 %v152_v31, %v79_v11  ;;  %v97_v54 = vmul.f32 0.5, %v95_v42 }
  0x35   :  { %v92_v34 = vadd.f32 %v90_v32, %v88_v27  ;;  %v100_v52 = vmul.f32 0.5, %v98_v41  ;;  %v66_v56 = vadd.f32 %v64_v45, %v60_v44  ;;  %v67_v59 = vadd.f32 %v65_v48, %v61_v47 }
  0x36   :  { %v93_v35 = vadd.f32 %v91_v33, %v89_v30  ;;  %v101_v55 = vmul.f32 0.5, %v99_v43 }
  0x37   :  { %157 = vlog2.f32 %v92_v34  ;;  %v102_v62 = vadd.f32 %v100_v52, %v96_v51 }
  0x38   :  { %159 = vlog2.f32 %v93_v35  ;;  %v103_v0 = vadd.f32 %v101_v55, %v97_v54 }
  0x40   :  { %v154_v46 = vpop.eup %153 }
  0x41   :  { %v156_v49 = vpop.eup %155  ;;  %v69_v50 = vmul.f32 0.6931472, %v154_v46 }
  0x42   :  { %v71_v53 = vmul.f32 0.6931472, %v156_v49 }
  0x43   :  { %v72_v57 = vmul.f32 %v69_v50, %v56_v26 }
  0x44   :  { %v158_v58 = vpop.eup %157  ;;  %v73_v60 = vmul.f32 %v71_v53, %v57_v29 }
  0x45   :  { %v160_v61 = vpop.eup %159  ;;  %v105_v63 = vmul.f32 0.6931472, %v158_v58  ;;  %v74_v2 = vsub.f32 %v66_v56, %v72_v57 }
  0x46   :  { %v107_v1 = vmul.f32 0.6931472, %v160_v61  ;;  %v75_v4 = vsub.f32 %v67_v59, %v73_v60 }
  0x47   :  { %v108_v3 = vmul.f32 %v105_v63, %v92_v34 }
  0x48   :  { %v109_v5 = vmul.f32 %v107_v1, %v93_v35 }
  0x49   :  { %v110_v6 = vsub.f32 %v102_v62, %v108_v3 }
  0x4a   :  { %v111_v7 = vsub.f32 %v103_v0, %v109_v5 }
  0x4b   :  { %v112_v8 = vadd.f32 %v110_v6, %v74_v2 }
  0x4c   :  { %v113_v9 = vadd.f32 %v111_v7, %v75_v4 }
  0x4e   :  { %v114_v10 = vadd.f32 %v113_v9, %v112_v8 }
  0x50   :  { %115 = vst [vmem:[#allocation7] sm:$0xff] %v114_v10 }
  0x51   :  { %212 = shalt.err (!%p209_p0)
}
  0x52   :  { %125 = dma.vmem_to_hbm [thread:$0]  %s123_s1, 128, %s258_s2, [#allocation4]  }
  0x53   :  { %225 = dma.done.wait [#allocation4], 128  }
  0x54   :  { %226 = vsyncadd [#allocation4], 4294967168 }
  0x55   :  { %129 = vsyncpa [#allocation3], 1 }
  0x56   :  { %130 = vsyncpa [#allocation6], 1 }
  0x57   :  { %131 = vsyncpa [#allocation4], 1 }

</bundles_post_ra>
